<compile_context>
chip_gen: v5e
topology: v5e:2x2
jax: 0.10.0
libtpu: 0.0.40
codegen_flags: <defaults>
</compile_context>

<pallas_src>
import functools

import jax
import jax.numpy as jnp
import numpy as np
from jax.experimental import pallas as pl
from jax.experimental.pallas import tpu as pltpu

IMAGENET_MEAN = (0.485, 0.456, 0.406)
IMAGENET_STD = (0.229, 0.224, 0.225)

LANES = 128


def _round_up(x, m):
    return (x + m - 1) // m * m


# ---------------------------------------------------------------------------
# Pallas kernel: tiled GEMM + bias + ReLU (MXU), bf16 inputs, f32 accumulate
# ---------------------------------------------------------------------------
def _gemm_bias_relu_kernel(p_ref, w_ref, b_ref, o_ref):
    acc = jnp.dot(p_ref[...], w_ref[...], preferred_element_type=jnp.float32)
    o_ref[...] = jnp.maximum(acc + b_ref[...], 0.0)


def gemm_bias_relu(patches_bf16, w_bf16, bias_f32, *, tm):
    """(Mp, K)bf16 @ (K, Np)bf16 + (1, Np)f32, ReLU.  M tiled; W/b resident."""
    Mp, K = patches_bf16.shape
    _, Np = w_bf16.shape
    assert Mp % tm == 0 and Np % LANES == 0
    grid_m = Mp // tm

    flops = 2 * Mp * K * Np
    bytes_accessed = (Mp * K * 2        # patches (bf16)
                      + K * Np * 2      # weights (bf16)
                      + Np * 4          # bias (f32)
                      + Mp * Np * 4)    # output (f32)

    return pl.pallas_call(
        _gemm_bias_relu_kernel,
        out_shape=jax.ShapeDtypeStruct((Mp, Np), jnp.float32),
        grid_spec=pltpu.PrefetchScalarGridSpec(
            num_scalar_prefetch=0,
            grid=(grid_m,),
            in_specs=[
                pl.BlockSpec((tm, K), lambda i: (i, 0)),   # streamed over M
                pl.BlockSpec((K, Np), lambda i: (0, 0)),   # resident weights
                pl.BlockSpec((1, Np), lambda i: (0, 0)),   # resident bias
            ],
            out_specs=pl.BlockSpec((tm, Np), lambda i: (i, 0)),
        ),
        compiler_params=pltpu.CompilerParams(
            dimension_semantics=("parallel",),      # 2-TC sharding on v7x
            vmem_limit_bytes=32 * 1024 * 1024),     # safe on v5e/v6e/v7x
        cost_estimate=pl.CostEstimate(
            flops=flops, transcendentals=0, bytes_accessed=bytes_accessed),
    )(patches_bf16, w_bf16, bias_f32)


# ---------------------------------------------------------------------------
# Normalization folding + im2col glue (plain JAX, shapes static under jit)
# ---------------------------------------------------------------------------
def fold_normalization(weight, bias):
    """Fold ImageNet Normalize into conv weight/bias.

    Exact (including conv borders) provided the *raw* image is padded with the
    per-channel mean, so that the implied normalized padding value is 0.
    """
    C = weight.shape[1]
    mean = jnp.asarray(IMAGENET_MEAN, jnp.float32)
    inv_std = 1.0 / jnp.asarray(IMAGENET_STD, jnp.float32)
    w_fold = weight * inv_std.reshape(1, C, 1, 1)
    b_fold = bias - jnp.sum(weight * (mean * inv_std).reshape(1, C, 1, 1),
                            axis=(1, 2, 3))
    return w_fold, b_fold


def mean_pad_nchw(img, pad):
    """Pad the raw NCHW image with the per-channel ImageNet mean."""
    C = img.shape[1]
    return jnp.stack(
        [jnp.pad(img[:, c], ((0, 0), (pad, pad), (pad, pad)),
                 constant_values=float(IMAGENET_MEAN[c])) for c in range(C)],
        axis=1)


@functools.partial(jax.jit, static_argnames=("stride", "pad", "tm"))
def fast_stem_forward(img, weight, bias, *, stride=2, pad=1, tm=1024):
    """Normalize(ImageNet) + 3x3/s2 conv + bias + ReLU, fused into one GEMM.

    img:    (N, C=3, H, W) float32 raw image (NCHW, PyTorch layout)
    weight: (Cout, Cin, KH, KW)   bias: (Cout,)
    returns (N, OH, OW, Cout) float32 feature map in NHWC (channels on lanes).
    """
    N, C, H, W = img.shape
    Cout, Cin, KH, KW = weight.shape
    assert Cin == C == 3
    OH = (H + 2 * pad - KH) // stride + 1
    OW = (W + 2 * pad - KW) // stride + 1

    # Fold normalization into the conv; mean-pad the raw image (exact).
    w_fold, b_fold = fold_normalization(weight, bias)
    xp = mean_pad_nchw(img, pad)                         # (N, C, Hp, Wp)

    # im2col on the raw (mean-padded) image; feature index = c*KH*KW + kh*KW + kw
    cols = []
    for kh in range(KH):
        for kw in range(KW):
            cols.append(xp[:, :, kh:kh + stride * OH:stride,
                              kw:kw + stride * OW:stride])
    patches = jnp.stack(cols, axis=2)                    # (N, C, KH*KW, OH, OW)
    patches = patches.reshape(N, C * KH * KW, OH, OW)
    patches = patches.transpose(0, 2, 3, 1).reshape(N * OH * OW, C * KH * KW)

    K = C * KH * KW
    M = N * OH * OW
    Coutp = _round_up(Cout, LANES)                       # lane-dense columns
    tm_eff = min(tm, _round_up(M, 8))                    # sublane-aligned tile
    Mp = _round_up(M, tm_eff)

    patches_p = jnp.pad(patches, ((0, Mp - M), (0, 0))).astype(jnp.bfloat16)
    w2d_p = jnp.pad(w_fold.reshape(Cout, K).T,
                    ((0, 0), (0, Coutp - Cout))).astype(jnp.bfloat16)
    b2d_p = jnp.pad(b_fold.reshape(1, Cout), ((0, 0), (0, Coutp - Cout)))

    out = gemm_bias_relu(patches_p, w2d_p, b2d_p, tm=tm_eff)
    return out[:M, :Cout].reshape(N, OH, OW, Cout)       # NHWC, no transpose


# ---------------------------------------------------------------------------
# FASTWrapper equivalent
# ---------------------------------------------------------------------------
class FASTWrapperPallas:
    def __init__(self, key, stem_out_channels=16):
        kw, kb = jax.random.split(key)
        # BN-fused stem conv (rep_model_convert + fuse_module -> conv + bias).
        self.stem_w = jax.random.normal(
            kw, (stem_out_channels, 3, 3, 3), jnp.float32) * 0.1
        self.stem_b = jax.random.normal(
            kb, (stem_out_channels,), jnp.float32) * 0.01
        # TODO(synk): the rest of the FAST detector (TextNet backbone stages,
        # FASTNeck, FASTHead, connected-component post-processing with
        # min_score/min_area filtering) is built from an external config file
        # and checkpoint and cannot be reproduced faithfully here.

    def forward(self, img):
        # Normalization is folded into the stem conv -> single Pallas pass.
        feat_nhwc = fast_stem_forward(img, self.stem_w, self.stem_b,
                                      stride=2, pad=1)
        # NHWC kept internally (TPU-native layout); convert once at the model
        # boundary only if a downstream consumer needs NCHW.
        return {"stem_features_nhwc": feat_nhwc}


if __name__ == "__main__":
    key = jax.random.PRNGKey(0)
    k_img, k_model = jax.random.split(key)

    # small shapes: batch=2, channels=3 (RGB required by ImageNet normalize), 16x16
    img = jax.random.uniform(k_img, (2, 3, 16, 16), jnp.float32)

    model = FASTWrapperPallas(k_model, stem_out_channels=16)
    out = model.forward(img)
    jax.block_until_ready(out)

    got_nchw = jnp.transpose(out["stem_features_nhwc"], (0, 3, 1, 2))  # test only

    # Semantic reference: exact f32 normalize -> zero-pad conv -> bias -> ReLU.
    mean = jnp.asarray(IMAGENET_MEAN, jnp.float32).reshape(1, 3, 1, 1)
    std = jnp.asarray(IMAGENET_STD, jnp.float32).reshape(1, 3, 1, 1)
    ref_norm = (img - mean) / std
    ref_conv = jax.lax.conv_general_dilated(
        ref_norm, model.stem_w, window_strides=(2, 2), padding=((1, 1), (1, 1)),
        dimension_numbers=("NCHW", "OIHW", "NCHW"))
    ref_feat = jnp.maximum(ref_conv + model.stem_b.reshape(1, -1, 1, 1), 0.0)
    # bf16 inputs on the MXU => looser tolerance vs the pure-f32 reference.
    assert np.allclose(np.asarray(got_nchw), np.asarray(ref_feat),
                       rtol=5e-2, atol=5e-2), float(
        np.max(np.abs(np.asarray(got_nchw) - np.asarray(ref_feat))))

    # Tight check of the Pallas GEMM itself: same folded bf16 weights and
    # mean-padded bf16 image through XLA's conv (f32 accumulation).
    w_fold, b_fold = fold_normalization(model.stem_w, model.stem_b)
    xp_q = mean_pad_nchw(img, 1).astype(jnp.bfloat16).astype(jnp.float32)
    w_q = w_fold.astype(jnp.bfloat16).astype(jnp.float32)
    ref2 = jax.lax.conv_general_dilated(
        xp_q, w_q, window_strides=(2, 2), padding="VALID",
        dimension_numbers=("NCHW", "OIHW", "NCHW"))
    ref2 = jnp.maximum(ref2 + b_fold.reshape(1, -1, 1, 1), 0.0)
    assert np.allclose(np.asarray(got_nchw), np.asarray(ref2),
                       rtol=5e-3, atol=5e-3), float(
        np.max(np.abs(np.asarray(got_nchw) - np.asarray(ref2))))

    print("KERNEL_OK")
</pallas_src>

<mosaic_0001>
module attributes {stable_mosaic.version = 11 : i64} {
  func.func @_gemm_bias_relu_kernel(%arg0: i32, %arg1: memref<128x27xbf16, #tpu.memory_space<vmem>>, %arg2: memref<27x128xbf16, #tpu.memory_space<vmem>>, %arg3: memref<1x128xf32, #tpu.memory_space<vmem>>, %arg4: memref<128x128xf32, #tpu.memory_space<vmem>>) attributes {dimension_semantics = [#tpu.dimension_semantics<parallel>], iteration_bounds = array<i64: 1>, scalar_prefetch = 0 : i64, scratch_operands = 0 : i64, tpu.core_type = #tpu.core_type<tc>, window_params = [{transform_indices = @transform_0, window_bounds = array<i64: 128, 27>}, {pipeline_mode = #tpu.pipeline_mode<synchronous>, transform_indices = @transform_1, window_bounds = array<i64: 27, 128>}, {pipeline_mode = #tpu.pipeline_mode<synchronous>, transform_indices = @transform_2, window_bounds = array<i64: 1, 128>}, {transform_indices = @transform_3, window_bounds = array<i64: 128, 128>}]} {
    %c0 = arith.constant 0 : index
    %c0_0 = arith.constant 0 : index
    %0 = vector.load %arg1[%c0, %c0_0] : memref<128x27xbf16, #tpu.memory_space<vmem>>, vector<128x27xbf16>
    %c0_1 = arith.constant 0 : index
    %c0_2 = arith.constant 0 : index
    %1 = vector.load %arg2[%c0_1, %c0_2] : memref<27x128xbf16, #tpu.memory_space<vmem>>, vector<27x128xbf16>
    %cst = arith.constant dense<0.000000e+00> : vector<128x128xf32>
    %2 = tpu.matmul %0, %1, %cst {dimension_numbers = #tpu.dot_dimension_numbers<[1], [0], [0], [1], [0, 0, 1, 1], [], []>} : vector<128x27xbf16>, vector<27x128xbf16>, vector<128x128xf32> -> vector<128x128xf32>
    %c0_3 = arith.constant 0 : index
    %c0_4 = arith.constant 0 : index
    %3 = vector.load %arg3[%c0_3, %c0_4] : memref<1x128xf32, #tpu.memory_space<vmem>>, vector<1x128xf32>
    %4 = vector.broadcast %3 : vector<1x128xf32> to vector<128x128xf32>
    %5 = arith.addf %2, %4 : vector<128x128xf32>
    %cst_5 = arith.constant 0.000000e+00 : f32
    %6 = vector.broadcast %cst_5 : f32 to vector<128x128xf32>
    %7 = arith.maximumf %5, %6 : vector<128x128xf32>
    %c0_6 = arith.constant 0 : index
    %c0_7 = arith.constant 0 : index
    %8 = vector.load %arg4[%c0_6, %c0_7] : memref<128x128xf32, #tpu.memory_space<vmem>>, vector<128x128xf32>
    tpu.vector_store %arg4[%c0_6, %c0_7], %7 {strides = array<i32>} : memref<128x128xf32, #tpu.memory_space<vmem>>, vector<128x128xf32>,
    return
  }
  func.func @transform_0(%arg0: i32) -> (i32, i32) {
    %c0_i32 = arith.constant 0 : i32
    %c0_i32_0 = arith.constant 0 : i32
    return %arg0, %c0_i32 : i32, i32
  }
  func.func @transform_1(%arg0: i32) -> (i32, i32) {
    %c0_i32 = arith.constant 0 : i32
    %c0_i32_0 = arith.constant 0 : i32
    %c0_i32_1 = arith.constant 0 : i32
    return %c0_i32, %c0_i32_0 : i32, i32
  }
  func.func @transform_2(%arg0: i32) -> (i32, i32) {
    %c0_i32 = arith.constant 0 : i32
    %c0_i32_0 = arith.constant 0 : i32
    %c0_i32_1 = arith.constant 0 : i32
    return %c0_i32, %c0_i32_0 : i32, i32
  }
  func.func @transform_3(%arg0: i32) -> (i32, i32) {
    %c0_i32 = arith.constant 0 : i32
    %c0_i32_0 = arith.constant 0 : i32
    return %arg0, %c0_i32 : i32, i32
  }
}

</mosaic_0001>

<bundles_post_ra>
// kernel: fast_stem_forward.1
= control target key start
LH: loop header
LB: loop body
LE: loop exit
PB: predicated region body
PF: predicated region fallthrough
CT: control target
= control target key end

     0   :  { %vm116_vm0 = vcmask 1044480   ;;  %vm117_vm1 = vcmask 1045504   ;;  %v317_v3 = vmov 65535   ;;  %s406_s0 = inlined_call_operand.vmem [shape: bf16[128,27], index: 0, kind: input, shape index: {}]   ;;  %s407_s1 = inlined_call_operand.vmem [shape: bf16[27,128], index: 1, kind: input, shape index: {}]   ;;  %s408_s2 = inlined_call_operand.vmem [shape: f32[1,128], index: 2, kind: input, shape index: {}]   ;;  %s409_s3 = inlined_call_operand.hbm [shape: f32[128,128], index: 3, kind: output, shape index: {}]  }
   0x1   :  { %v260_v0 = vld [vmem:[%s407_s1 + $0x8] sm:$0xf]  ;;  %v279_v1 = vld [vmem:[%s407_s1 + $0x8] sm:$0x30]  ;;  %v118_v4 = vsel %vm116_vm0, 4294967295, %v317_v3 }
   0x2   :  { %v261_v2 = vor.u32 %v279_v1, %v260_v0  ;;  %v119_v5 = vsel %vm117_vm1, %v118_v4, 0 }
   0x4   :  { %v121_v6 = vand.u32 %v261_v2, %v119_v5 }
   0x5   :  { %8 = vsyncpa [#allocation3], 0  ;;  %v278_v7 = vld [vmem:[%s407_s1] sm:$0xff]  ;;  %v272_v9 = vld [vmem:[%s406_s0 + $0x10] sm:$0xff]  ;;  %vm91_vm2 = vcmask 220160   ;;  %s210_s10 = sshll.u32 %s409_s3, 4  ;;  %s211_s10 = int_to_ptr.hbm [resolvable:$true] %s210_s10 }
   0x6   :  { %129 = vmatpush.bf16.msra.mxu0 %v121_v6  ;;  %280 = vmatpush.bf16.msra.mxu1 %v121_v6  ;;  %v270_v8 = vld [vmem:[%s406_s0] sm:$0xff]  ;;  %v276_v11 = vld [vmem:[%s406_s0 + $0x30] sm:$0xff]  ;;  %v271_v12 = vld [vmem:[%s406_s0 + $0x8] sm:$0xff]  ;;  %s319_s11 = smov 128   ;;  %s320_s12 = smov 8  }
   0x7   :  { %281 = vmatpush.bf16.msra.mxu2 %v121_v6  ;;  %282 = vmatpush.bf16.msra.mxu3 %v121_v6  ;;  %v274_v10 = vld [vmem:[%s406_s0 + $0x20] sm:$0xff]  ;;  %v273_v13 = vld [vmem:[%s406_s0 + $0x18] sm:$0xff]  ;;  %v275_v14 = vld [vmem:[%s406_s0 + $0x28] sm:$0xff] }
   0x8   :  { %v277_v15 = vld [vmem:[%s406_s0 + $0x38] sm:$0xff]  ;;  %v385_v16 = vld [vmem:[%s408_s2] ss:$0 sm:$0xff]  ;;  %s318_s0 = smov [#allocation2]  }
   0x9   :  { %s208_s2 = sshll.u32 %s318_s0, 4  ;;  %s209_s2 = int_to_ptr.vmem [resolvable:$true] %s208_s2 }
   0xa   :  { %130 = vmatpush.bf16.msra.mxu0 %v278_v7  ;;  %283 = vmatpush.bf16.msra.mxu1 %v278_v7 }
   0xb   :  { %284 = vmatpush.bf16.msra.mxu2 %v278_v7  ;;  %285 = vmatpush.bf16.msra.mxu3 %v278_v7 }
   0xd   :  { %262 = vmatmul.msk.bf16.vlgmr.msra.gmra.mxu0 %vm91_vm2, %v270_v8  ;;  %264 = vmatmul.msk.bf16.vlgmr.msra.gmra.mxu1 %vm91_vm2, %v272_v9 }
   0xe   :  { %266 = vmatmul.msk.bf16.vlgmr.msra.gmra.mxu2 %vm91_vm2, %v274_v10  ;;  %268 = vmatmul.msk.bf16.vlgmr.msra.gmra.mxu3 %vm91_vm2, %v276_v11 }
  0x1d   :  { %263 = vmatmul.msk.bf16.gmra.mxu0 %vm91_vm2, %v271_v12  ;;  %265 = vmatmul.msk.bf16.gmra.mxu1 %vm91_vm2, %v273_v13 }
  0x1e   :  { %267 = vmatmul.msk.bf16.gmra.mxu2 %vm91_vm2, %v275_v14  ;;  %269 = vmatmul.msk.bf16.gmra.mxu3 %vm91_vm2, %v277_v15 }
  0x8a   :  { %v132_v17 = vpop.f32.mrf.mxu0  ;;  %v142_v18 = vpop.f32.mrf.mxu1 }
  0x8b   :  { %v133_v19 = vadd.f32 %v385_v16, %v132_v17  ;;  %v143_v20 = vadd.f32 %v385_v16, %v142_v18 }
  0x8d   :  { %v172_v21 = vmax.f32 %v133_v19, 0.0  ;;  %v176_v22 = vmax.f32 %v143_v20, 0.0 }
  0x8f   :  { %188 = vst [vmem:[#allocation2] sm:$0xff] %v172_v21 }
  0x90   :  { %192 = vst [vmem:[#allocation2 + $0x20] sm:$0xff] %v176_v22 }
  0x91   :  { %v152_v23 = vpop.f32.mrf.mxu2  ;;  %v162_v24 = vpop.f32.mrf.mxu3 }
  0x92   :  { %v153_v25 = vadd.f32 %v385_v16, %v152_v23  ;;  %v163_v26 = vadd.f32 %v385_v16, %v162_v24  ;;  %v134_v27 = vpop.f32.mrf.mxu0  ;;  %v144_v28 = vpop.f32.mrf.mxu1 }
  0x93   :  { %v135_v29 = vadd.f32 %v385_v16, %v134_v27  ;;  %v145_v30 = vadd.f32 %v385_v16, %v144_v28 }
  0x94   :  { %v180_v31 = vmax.f32 %v153_v25, 0.0  ;;  %v184_v32 = vmax.f32 %v163_v26, 0.0 }
  0x95   :  { %v173_v33 = vmax.f32 %v135_v29, 0.0  ;;  %v177_v34 = vmax.f32 %v145_v30, 0.0 }
  0x96   :  { %196 = vst [vmem:[#allocation2 + $0x40] sm:$0xff] %v180_v31 }
  0x97   :  { %200 = vst [vmem:[#allocation2 + $0x60] sm:$0xff] %v184_v32 }
  0x98   :  { %189 = vst [vmem:[#allocation2 + $0x8] sm:$0xff] %v173_v33 }
  0x99   :  { %193 = vst [vmem:[#allocation2 + $0x28] sm:$0xff] %v177_v34  ;;  %v154_v35 = vpop.f32.mrf.mxu2  ;;  %v164_v36 = vpop.f32.mrf.mxu3 }
  0x9a   :  { %v155_v37 = vadd.f32 %v385_v16, %v154_v35  ;;  %v165_v38 = vadd.f32 %v385_v16, %v164_v36  ;;  %v137_v39 = vpop.f32.mrf.mxu0  ;;  %v147_v40 = vpop.f32.mrf.mxu1 }
  0x9b   :  { %v138_v41 = vadd.f32 %v385_v16, %v137_v39  ;;  %v148_v42 = vadd.f32 %v385_v16, %v147_v40 }
  0x9c   :  { %v181_v43 = vmax.f32 %v155_v37, 0.0  ;;  %v185_v44 = vmax.f32 %v165_v38, 0.0 }
  0x9d   :  { %v174_v45 = vmax.f32 %v138_v41, 0.0  ;;  %v178_v46 = vmax.f32 %v148_v42, 0.0 }
  0x9e   :  { %197 = vst [vmem:[#allocation2 + $0x48] sm:$0xff] %v181_v43 }
  0x9f   :  { %201 = vst [vmem:[#allocation2 + $0x68] sm:$0xff] %v185_v44 }
  0xa0   :  { %190 = vst [vmem:[#allocation2 + $0x10] sm:$0xff] %v174_v45 }
  0xa1   :  { %194 = vst [vmem:[#allocation2 + $0x30] sm:$0xff] %v178_v46  ;;  %v157_v47 = vpop.f32.mrf.mxu2  ;;  %v167_v48 = vpop.f32.mrf.mxu3 }
  0xa2   :  { %v158_v49 = vadd.f32 %v385_v16, %v157_v47  ;;  %v168_v50 = vadd.f32 %v385_v16, %v167_v48  ;;  %v139_v51 = vpop.f32.mrf.mxu0  ;;  %v149_v52 = vpop.f32.mrf.mxu1 }
  0xa3   :  { %v140_v53 = vadd.f32 %v385_v16, %v139_v51  ;;  %v150_v54 = vadd.f32 %v385_v16, %v149_v52 }
  0xa4   :  { %v182_v55 = vmax.f32 %v158_v49, 0.0  ;;  %v186_v56 = vmax.f32 %v168_v50, 0.0 }
  0xa5   :  { %v175_v57 = vmax.f32 %v140_v53, 0.0  ;;  %v179_v58 = vmax.f32 %v150_v54, 0.0 }
  0xa6   :  { %198 = vst [vmem:[#allocation2 + $0x50] sm:$0xff] %v182_v55 }
  0xa7   :  { %202 = vst [vmem:[#allocation2 + $0x70] sm:$0xff] %v186_v56 }
  0xa8   :  { %191 = vst [vmem:[#allocation2 + $0x18] sm:$0xff] %v175_v57 }
  0xa9   :  { %195 = vst [vmem:[#allocation2 + $0x38] sm:$0xff] %v179_v58  ;;  %v159_v59 = vpop.f32.mrf.mxu2  ;;  %v169_v60 = vpop.f32.mrf.mxu3 }
  0xaa   :  { %v160_v61 = vadd.f32 %v385_v16, %v159_v59  ;;  %v170_v62 = vadd.f32 %v385_v16, %v169_v60 }
  0xac   :  { %v183_v63 = vmax.f32 %v160_v61, 0.0  ;;  %v187_v0 = vmax.f32 %v170_v62, 0.0 }
  0xae   :  { %199 = vst [vmem:[#allocation2 + $0x58] sm:$0xff] %v183_v63 }
  0xaf   :  { %203 = vst [vmem:[#allocation2 + $0x78] sm:$0xff] %v187_v0 }
  0xb0   :  { %216 = dma.vmem_to_hbm [thread:$0]  %s209_s2, 2048, %s211_s10, [#allocation3], %s319_s11, %s319_s11, %s320_s12  }
  0xb1   :  { %315 = dma.done.wait [#allocation3], 2048  }
  0xb2   :  { %316 = vsyncadd [#allocation3], 4294965248 }
  0xb3   :  { %221 = vsyncpa [#allocation3], 1 }

</bundles_post_ra>
